<compile_context>
chip_gen: v6e
topology: v6e:2x2x1
jax: 0.10.0
libtpu: 0.0.40
codegen_flags: <defaults>
</compile_context>

<pallas_src>
import functools

import jax
import jax.numpy as jnp
from jax import lax
from jax.experimental import pallas as pl
from jax.experimental.pallas import tpu as pltpu

_LANE = 128   # TPU lane width (channel tile)
_SUB = 8      # TPU sublane width (alignment unit for the second-minor dim)


def _round_up(x, m):
    return pl.cdiv(x, m) * m


def _xcorr_depthwise_kernel(box_ref, tgt_ref, out_ref, *, hk, wk, ho, wo_pad):
    """Depthwise cross-correlation for one (batch, 128-channel-slab) block.

    box_ref: (1, H, W_pad, 128)      search feature slab (native dtype)
    tgt_ref: (1, Tap_pad, 128) f32   template taps flattened onto sublanes
    out_ref: (1, Ho, Wo_pad, 128)    output rows (input dtype by default)
    """
    w_pad = box_ref.shape[2]
    lane = out_ref.shape[-1]

    # Template taps for this channel slab: loaded once per grid step and kept
    # live in registers across the whole row loop (<= 7 vregs for a 7x7 head).
    # Already f32 (upcast in the wrapper) -> no per-tap converts in the loop.
    tgt = tgt_ref[0]

    def row_body(r, carry):
        # Row-wise accumulation: only a (Wo_pad, 128) f32 accumulator is live
        # (<= 4 vregs for Wo_pad <= 32), independent of Ho -> no vreg spills.
        acc = jnp.zeros((wo_pad, lane), jnp.float32)
        for p in range(hk):
            # One aligned, sublane-dense load per template row (w_pad % 8 == 0
            # keeps the dynamic row offset 8-sublane aligned).  The q-shifted
            # windows are then derived in-register via static sublane slices
            # (cheap XLU shifts) instead of re-reading wk overlapping,
            # misaligned windows from VMEM per tap.
            rows = box_ref[0, pl.ds(r + p, 1), :, :].reshape(w_pad, lane)
            rows = rows.astype(jnp.float32)          # upcast once per load
            for q in range(wk):
                win = rows[q:q + wo_pad, :]          # static sublane slice
                ker = tgt[p * wk + q, :]             # one tap vector (f32)
                acc = acc + win * ker[None, :]       # f32 mul / f32 accumulate
        # Unmasked full-tile store (wo_pad % 8 == 0, lane-dense 128 channels).
        out_ref[0, pl.ds(r, 1), :, :] = (
            acc.reshape(1, wo_pad, lane).astype(out_ref.dtype))
        return carry

    lax.fori_loop(0, ho, row_body, 0)


def detector_forward_nhwc(target_nhwc, box_nhwc, out_dtype=None):
    """Depthwise xcorr in NHWC (no layout transposes — preferred entry point).

    Args:
      target_nhwc: (B, Hk, Wk, C) template feature
      box_nhwc:    (B, H,  W,  C) search feature
      out_dtype:   output dtype; defaults to the search-feature dtype.
    Returns:
      (B, Ho, Wo, C), Ho = H - Hk + 1, Wo = W - Wk + 1.
    """
    b, hk, wk, c = target_nhwc.shape
    b2, h, w, c2 = box_nhwc.shape
    assert b == b2 and c == c2
    ho, wo = h - hk + 1, w - wk + 1
    if out_dtype is None:
        out_dtype = box_nhwc.dtype

    c_pad = _round_up(c, _LANE)
    n_c = c_pad // _LANE
    wo_pad = _round_up(wo, _SUB)                 # unmasked output stores
    w_pad = _round_up(wo_pad + wk - 1, _SUB)     # in-bounds + aligned row loads
    n_tap = hk * wk
    tap_pad = _round_up(n_tap, _SUB)

    # Pad channels to a lane multiple and W so every in-kernel window slice is
    # in-bounds; template is flattened to (taps, C) and upcast to f32 once.
    box = jnp.pad(box_nhwc,
                  ((0, 0), (0, 0), (0, w_pad - w), (0, c_pad - c)))
    tgt = jnp.pad(target_nhwc.reshape(b, n_tap, c).astype(jnp.float32),
                  ((0, 0), (0, tap_pad - n_tap), (0, c_pad - c)))

    kernel = functools.partial(_xcorr_depthwise_kernel,
                               hk=hk, wk=wk, ho=ho, wo_pad=wo_pad)

    out = pl.pallas_call(
        kernel,
        out_shape=jax.ShapeDtypeStruct((b, ho, wo_pad, c_pad), out_dtype),
        grid_spec=pltpu.PrefetchScalarGridSpec(
            num_scalar_prefetch=0,
            grid=(b, n_c),
            in_specs=[
                # Full search slab for one (batch, 128-channel) pair.
                pl.BlockSpec((1, h, w_pad, _LANE),
                             lambda bi, ci: (bi, 0, 0, ci)),
                # Flattened template taps for this channel slab (f32).
                pl.BlockSpec((1, tap_pad, _LANE),
                             lambda bi, ci: (bi, 0, ci)),
            ],
            out_specs=pl.BlockSpec((1, ho, wo_pad, _LANE),
                                   lambda bi, ci: (bi, 0, 0, ci)),
        ),
        compiler_params=pltpu.CompilerParams(
            dimension_semantics=("parallel", "parallel")),
    )(box, tgt)

    # TODO(synk): if producers/consumers stay NHWC and C % 128 == 0, wo % 8 == 0
    # these slices are no-ops; otherwise they are tiny compared to the kernel.
    return out[:, :, :wo, :c]


def detector_forward(target_feat, box_feat, out_dtype=None):
    """SiamBAN detector head, NCHW interface matching the PyTorch module.

    Args:
      target_feat: (B, C, Hk, Wk)
      box_feat:    (B, C, H,  W)
    Returns:
      (B, C, H - Hk + 1, W - Wk + 1), dtype = box_feat.dtype by default.
    """
    # TODO(synk): in a full SiamBAN model keep producer/consumer in NHWC and
    # call detector_forward_nhwc directly so these transposes fuse away.
    tgt_nhwc = jnp.transpose(target_feat, (0, 2, 3, 1))
    box_nhwc = jnp.transpose(box_feat, (0, 2, 3, 1))
    out_nhwc = detector_forward_nhwc(tgt_nhwc, box_nhwc, out_dtype=out_dtype)
    return jnp.transpose(out_nhwc, (0, 3, 1, 2))


def _reference_xcorr_depthwise(target_feat, box_feat):
    """Plain-JAX reference (NCHW depthwise cross-correlation, f32 accumulate)."""
    b, c, hk, wk = target_feat.shape
    _, _, h, w = box_feat.shape
    ho, wo = h - hk + 1, w - wk + 1
    out = jnp.zeros((b, c, ho, wo), jnp.float32)
    for p in range(hk):
        for q in range(wk):
            win = box_feat[:, :, p:p + ho, q:q + wo].astype(jnp.float32)
            ker = target_feat[:, :, p, q].astype(jnp.float32)
            out = out + win * ker[:, :, None, None]
    return out


if __name__ == "__main__":
    key = jax.random.PRNGKey(0)
    k1, k2, k3, k4 = jax.random.split(key, 4)

    # ---- case 1: small f32 smoke test, NCHW interface ----------------------
    B, C, H, W = 2, 4, 16, 16     # box (search) feature
    HK, WK = 4, 4                 # target (template) feature

    target_feat = jax.random.normal(k1, (B, C, HK, WK), dtype=jnp.float32)
    box_feat = jax.random.normal(k2, (B, C, H, W), dtype=jnp.float32)

    out = detector_forward(target_feat, box_feat)
    out = jax.block_until_ready(out)

    ref = _reference_xcorr_depthwise(target_feat, box_feat)
    assert out.shape == (B, C, H - HK + 1, W - WK + 1), out.shape
    assert jnp.allclose(out.astype(jnp.float32), ref, atol=1e-5, rtol=1e-5)

    # ---- case 2: bf16, padded-C / padded-Wo paths, NHWC entry point --------
    B2, C2, H2, W2, HK2, WK2 = 2, 96, 15, 15, 3, 3
    tgt2 = jax.random.normal(k3, (B2, HK2, WK2, C2), dtype=jnp.bfloat16)
    box2 = jax.random.normal(k4, (B2, H2, W2, C2), dtype=jnp.bfloat16)

    out2 = detector_forward_nhwc(tgt2, box2)          # bf16 out
    out2 = jax.block_until_ready(out2)
    assert out2.dtype == jnp.bfloat16
    assert out2.shape == (B2, H2 - HK2 + 1, W2 - WK2 + 1, C2), out2.shape

    ref2 = _reference_xcorr_depthwise(jnp.transpose(tgt2, (0, 3, 1, 2)),
                                      jnp.transpose(box2, (0, 3, 1, 2)))
    out2_nchw = jnp.transpose(out2, (0, 3, 1, 2)).astype(jnp.float32)
    assert jnp.allclose(out2_nchw, ref2, atol=5e-2, rtol=5e-2)

    print("KERNEL_OK")
</pallas_src>

<mosaic_0001>
module attributes {stable_mosaic.version = 11 : i64} {
  func.func @_xcorr_depthwise_kernel(%arg0: i32, %arg1: i32, %arg2: memref<1x16x24x128xf32, #tpu.memory_space<vmem>>, %arg3: memref<1x16x128xf32, #tpu.memory_space<vmem>>, %arg4: memref<1x13x16x128xf32, #tpu.memory_space<vmem>>) attributes {dimension_semantics = [#tpu.dimension_semantics<parallel>, #tpu.dimension_semantics<parallel>], iteration_bounds = array<i64: 2, 1>, scalar_prefetch = 0 : i64, scratch_operands = 0 : i64, tpu.core_type = #tpu.core_type<tc>, window_params = [{transform_indices = @transform_0, window_bounds = array<i64: 1, 16, 24, 128>}, {transform_indices = @transform_1, window_bounds = array<i64: 1, 16, 128>}, {transform_indices = @transform_2, window_bounds = array<i64: 1, 13, 16, 128>}]} {
    %c0 = arith.constant 0 : index
    %c0_0 = arith.constant 0 : index
    %c0_1 = arith.constant 0 : index
    %0 = vector.load %arg3[%c0, %c0_0, %c0_1] : memref<1x16x128xf32, #tpu.memory_space<vmem>>, vector<1x16x128xf32>
    %1 = vector.shape_cast %0 : vector<1x16x128xf32> to vector<16x128xf32>
    %c0_i32 = arith.constant 0 : i32
    %c13_i32 = arith.constant 13 : i32
    %2 = arith.addi %c0_i32, %c13_i32 : i32
    %c1_i32 = arith.constant 1 : i32
    scf.for %arg5 = %c0_i32 to %2 step %c1_i32  : i32 {
      %cst = arith.constant 0.000000e+00 : f32
      %3 = vector.broadcast %cst : f32 to vector<16x128xf32>
      %c0_i32_3 = arith.constant 0 : i32
      %4 = arith.addi %arg5, %c0_i32_3 : i32
      %c0_4 = arith.constant 0 : index
      %5 = arith.index_cast %4 : i32 to index
      %c0_5 = arith.constant 0 : index
      %c0_6 = arith.constant 0 : index
      %6 = vector.load %arg2[%c0_4, %5, %c0_5, %c0_6] : memref<1x16x24x128xf32, #tpu.memory_space<vmem>>, vector<1x1x24x128xf32>
      %7 = vector.shape_cast %6 : vector<1x1x24x128xf32> to vector<1x24x128xf32>
      %8 = vector.shape_cast %7 : vector<1x24x128xf32> to vector<24x128xf32>
      %9 = vector.extract_strided_slice %8 {offsets = [0, 0], sizes = [16, 128], strides = [1, 1]} : vector<24x128xf32> to vector<16x128xf32>
      %10 = vector.extract_strided_slice %1 {offsets = [0, 0], sizes = [1, 128], strides = [1, 1]} : vector<16x128xf32> to vector<1x128xf32>
      %11 = vector.shape_cast %10 : vector<1x128xf32> to vector<128xf32>
      %12 = vector.shape_cast %11 : vector<128xf32> to vector<1x128xf32>
      %13 = vector.broadcast %12 : vector<1x128xf32> to vector<16x128xf32>
      %14 = arith.mulf %9, %13 : vector<16x128xf32>
      %15 = arith.addf %3, %14 : vector<16x128xf32>
      %16 = vector.extract_strided_slice %8 {offsets = [1, 0], sizes = [16, 128], strides = [1, 1]} : vector<24x128xf32> to vector<16x128xf32>
      %17 = vector.extract_strided_slice %1 {offsets = [1, 0], sizes = [1, 128], strides = [1, 1]} : vector<16x128xf32> to vector<1x128xf32>
      %18 = vector.shape_cast %17 : vector<1x128xf32> to vector<128xf32>
      %19 = vector.shape_cast %18 : vector<128xf32> to vector<1x128xf32>
      %20 = vector.broadcast %19 : vector<1x128xf32> to vector<16x128xf32>
      %21 = arith.mulf %16, %20 : vector<16x128xf32>
      %22 = arith.addf %15, %21 : vector<16x128xf32>
      %23 = vector.extract_strided_slice %8 {offsets = [2, 0], sizes = [16, 128], strides = [1, 1]} : vector<24x128xf32> to vector<16x128xf32>
      %24 = vector.extract_strided_slice %1 {offsets = [2, 0], sizes = [1, 128], strides = [1, 1]} : vector<16x128xf32> to vector<1x128xf32>
      %25 = vector.shape_cast %24 : vector<1x128xf32> to vector<128xf32>
      %26 = vector.shape_cast %25 : vector<128xf32> to vector<1x128xf32>
      %27 = vector.broadcast %26 : vector<1x128xf32> to vector<16x128xf32>
      %28 = arith.mulf %23, %27 : vector<16x128xf32>
      %29 = arith.addf %22, %28 : vector<16x128xf32>
      %30 = vector.extract_strided_slice %8 {offsets = [3, 0], sizes = [16, 128], strides = [1, 1]} : vector<24x128xf32> to vector<16x128xf32>
      %31 = vector.extract_strided_slice %1 {offsets = [3, 0], sizes = [1, 128], strides = [1, 1]} : vector<16x128xf32> to vector<1x128xf32>
      %32 = vector.shape_cast %31 : vector<1x128xf32> to vector<128xf32>
      %33 = vector.shape_cast %32 : vector<128xf32> to vector<1x128xf32>
      %34 = vector.broadcast %33 : vector<1x128xf32> to vector<16x128xf32>
      %35 = arith.mulf %30, %34 : vector<16x128xf32>
      %36 = arith.addf %29, %35 : vector<16x128xf32>
      %c1_i32_7 = arith.constant 1 : i32
      %37 = arith.addi %arg5, %c1_i32_7 : i32
      %c0_8 = arith.constant 0 : index
      %38 = arith.index_cast %37 : i32 to index
      %c0_9 = arith.constant 0 : index
      %c0_10 = arith.constant 0 : index
      %39 = vector.load %arg2[%c0_8, %38, %c0_9, %c0_10] : memref<1x16x24x128xf32, #tpu.memory_space<vmem>>, vector<1x1x24x128xf32>
      %40 = vector.shape_cast %39 : vector<1x1x24x128xf32> to vector<1x24x128xf32>
      %41 = vector.shape_cast %40 : vector<1x24x128xf32> to vector<24x128xf32>
      %42 = vector.extract_strided_slice %41 {offsets = [0, 0], sizes = [16, 128], strides = [1, 1]} : vector<24x128xf32> to vector<16x128xf32>
      %43 = vector.extract_strided_slice %1 {offsets = [4, 0], sizes = [1, 128], strides = [1, 1]} : vector<16x128xf32> to vector<1x128xf32>
      %44 = vector.shape_cast %43 : vector<1x128xf32> to vector<128xf32>
      %45 = vector.shape_cast %44 : vector<128xf32> to vector<1x128xf32>
      %46 = vector.broadcast %45 : vector<1x128xf32> to vector<16x128xf32>
      %47 = arith.mulf %42, %46 : vector<16x128xf32>
      %48 = arith.addf %36, %47 : vector<16x128xf32>
      %49 = vector.extract_strided_slice %41 {offsets = [1, 0], sizes = [16, 128], strides = [1, 1]} : vector<24x128xf32> to vector<16x128xf32>
      %50 = vector.extract_strided_slice %1 {offsets = [5, 0], sizes = [1, 128], strides = [1, 1]} : vector<16x128xf32> to vector<1x128xf32>
      %51 = vector.shape_cast %50 : vector<1x128xf32> to vector<128xf32>
      %52 = vector.shape_cast %51 : vector<128xf32> to vector<1x128xf32>
      %53 = vector.broadcast %52 : vector<1x128xf32> to vector<16x128xf32>
      %54 = arith.mulf %49, %53 : vector<16x128xf32>
      %55 = arith.addf %48, %54 : vector<16x128xf32>
      %56 = vector.extract_strided_slice %41 {offsets = [2, 0], sizes = [16, 128], strides = [1, 1]} : vector<24x128xf32> to vector<16x128xf32>
      %57 = vector.extract_strided_slice %1 {offsets = [6, 0], sizes = [1, 128], strides = [1, 1]} : vector<16x128xf32> to vector<1x128xf32>
      %58 = vector.shape_cast %57 : vector<1x128xf32> to vector<128xf32>
      %59 = vector.shape_cast %58 : vector<128xf32> to vector<1x128xf32>
      %60 = vector.broadcast %59 : vector<1x128xf32> to vector<16x128xf32>
      %61 = arith.mulf %56, %60 : vector<16x128xf32>
      %62 = arith.addf %55, %61 : vector<16x128xf32>
      %63 = vector.extract_strided_slice %41 {offsets = [3, 0], sizes = [16, 128], strides = [1, 1]} : vector<24x128xf32> to vector<16x128xf32>
      %64 = vector.extract_strided_slice %1 {offsets = [7, 0], sizes = [1, 128], strides = [1, 1]} : vector<16x128xf32> to vector<1x128xf32>
      %65 = vector.shape_cast %64 : vector<1x128xf32> to vector<128xf32>
      %66 = vector.shape_cast %65 : vector<128xf32> to vector<1x128xf32>
      %67 = vector.broadcast %66 : vector<1x128xf32> to vector<16x128xf32>
      %68 = arith.mulf %63, %67 : vector<16x128xf32>
      %69 = arith.addf %62, %68 : vector<16x128xf32>
      %c2_i32 = arith.constant 2 : i32
      %70 = arith.addi %arg5, %c2_i32 : i32
      %c0_11 = arith.constant 0 : index
      %71 = arith.index_cast %70 : i32 to index
      %c0_12 = arith.constant 0 : index
      %c0_13 = arith.constant 0 : index
      %72 = vector.load %arg2[%c0_11, %71, %c0_12, %c0_13] : memref<1x16x24x128xf32, #tpu.memory_space<vmem>>, vector<1x1x24x128xf32>
      %73 = vector.shape_cast %72 : vector<1x1x24x128xf32> to vector<1x24x128xf32>
      %74 = vector.shape_cast %73 : vector<1x24x128xf32> to vector<24x128xf32>
      %75 = vector.extract_strided_slice %74 {offsets = [0, 0], sizes = [16, 128], strides = [1, 1]} : vector<24x128xf32> to vector<16x128xf32>
      %76 = vector.extract_strided_slice %1 {offsets = [8, 0], sizes = [1, 128], strides = [1, 1]} : vector<16x128xf32> to vector<1x128xf32>
      %77 = vector.shape_cast %76 : vector<1x128xf32> to vector<128xf32>
      %78 = vector.shape_cast %77 : vector<128xf32> to vector<1x128xf32>
      %79 = vector.broadcast %78 : vector<1x128xf32> to vector<16x128xf32>
      %80 = arith.mulf %75, %79 : vector<16x128xf32>
      %81 = arith.addf %69, %80 : vector<16x128xf32>
      %82 = vector.extract_strided_slice %74 {offsets = [1, 0], sizes = [16, 128], strides = [1, 1]} : vector<24x128xf32> to vector<16x128xf32>
      %83 = vector.extract_strided_slice %1 {offsets = [9, 0], sizes = [1, 128], strides = [1, 1]} : vector<16x128xf32> to vector<1x128xf32>
      %84 = vector.shape_cast %83 : vector<1x128xf32> to vector<128xf32>
      %85 = vector.shape_cast %84 : vector<128xf32> to vector<1x128xf32>
      %86 = vector.broadcast %85 : vector<1x128xf32> to vector<16x128xf32>
      %87 = arith.mulf %82, %86 : vector<16x128xf32>
      %88 = arith.addf %81, %87 : vector<16x128xf32>
      %89 = vector.extract_strided_slice %74 {offsets = [2, 0], sizes = [16, 128], strides = [1, 1]} : vector<24x128xf32> to vector<16x128xf32>
      %90 = vector.extract_strided_slice %1 {offsets = [10, 0], sizes = [1, 128], strides = [1, 1]} : vector<16x128xf32> to vector<1x128xf32>
      %91 = vector.shape_cast %90 : vector<1x128xf32> to vector<128xf32>
      %92 = vector.shape_cast %91 : vector<128xf32> to vector<1x128xf32>
      %93 = vector.broadcast %92 : vector<1x128xf32> to vector<16x128xf32>
      %94 = arith.mulf %89, %93 : vector<16x128xf32>
      %95 = arith.addf %88, %94 : vector<16x128xf32>
      %96 = vector.extract_strided_slice %74 {offsets = [3, 0], sizes = [16, 128], strides = [1, 1]} : vector<24x128xf32> to vector<16x128xf32>
      %97 = vector.extract_strided_slice %1 {offsets = [11, 0], sizes = [1, 128], strides = [1, 1]} : vector<16x128xf32> to vector<1x128xf32>
      %98 = vector.shape_cast %97 : vector<1x128xf32> to vector<128xf32>
      %99 = vector.shape_cast %98 : vector<128xf32> to vector<1x128xf32>
      %100 = vector.broadcast %99 : vector<1x128xf32> to vector<16x128xf32>
      %101 = arith.mulf %96, %100 : vector<16x128xf32>
      %102 = arith.addf %95, %101 : vector<16x128xf32>
      %c3_i32 = arith.constant 3 : i32
      %103 = arith.addi %arg5, %c3_i32 : i32
      %c0_14 = arith.constant 0 : index
      %104 = arith.index_cast %103 : i32 to index
      %c0_15 = arith.constant 0 : index
      %c0_16 = arith.constant 0 : index
      %105 = vector.load %arg2[%c0_14, %104, %c0_15, %c0_16] : memref<1x16x24x128xf32, #tpu.memory_space<vmem>>, vector<1x1x24x128xf32>
      %106 = vector.shape_cast %105 : vector<1x1x24x128xf32> to vector<1x24x128xf32>
      %107 = vector.shape_cast %106 : vector<1x24x128xf32> to vector<24x128xf32>
      %108 = vector.extract_strided_slice %107 {offsets = [0, 0], sizes = [16, 128], strides = [1, 1]} : vector<24x128xf32> to vector<16x128xf32>
      %109 = vector.extract_strided_slice %1 {offsets = [12, 0], sizes = [1, 128], strides = [1, 1]} : vector<16x128xf32> to vector<1x128xf32>
      %110 = vector.shape_cast %109 : vector<1x128xf32> to vector<128xf32>
      %111 = vector.shape_cast %110 : vector<128xf32> to vector<1x128xf32>
      %112 = vector.broadcast %111 : vector<1x128xf32> to vector<16x128xf32>
      %113 = arith.mulf %108, %112 : vector<16x128xf32>
      %114 = arith.addf %102, %113 : vector<16x128xf32>
      %115 = vector.extract_strided_slice %107 {offsets = [1, 0], sizes = [16, 128], strides = [1, 1]} : vector<24x128xf32> to vector<16x128xf32>
      %116 = vector.extract_strided_slice %1 {offsets = [13, 0], sizes = [1, 128], strides = [1, 1]} : vector<16x128xf32> to vector<1x128xf32>
      %117 = vector.shape_cast %116 : vector<1x128xf32> to vector<128xf32>
      %118 = vector.shape_cast %117 : vector<128xf32> to vector<1x128xf32>
      %119 = vector.broadcast %118 : vector<1x128xf32> to vector<16x128xf32>
      %120 = arith.mulf %115, %119 : vector<16x128xf32>
      %121 = arith.addf %114, %120 : vector<16x128xf32>
      %122 = vector.extract_strided_slice %107 {offsets = [2, 0], sizes = [16, 128], strides = [1, 1]} : vector<24x128xf32> to vector<16x128xf32>
      %123 = vector.extract_strided_slice %1 {offsets = [14, 0], sizes = [1, 128], strides = [1, 1]} : vector<16x128xf32> to vector<1x128xf32>
      %124 = vector.shape_cast %123 : vector<1x128xf32> to vector<128xf32>
      %125 = vector.shape_cast %124 : vector<128xf32> to vector<1x128xf32>
      %126 = vector.broadcast %125 : vector<1x128xf32> to vector<16x128xf32>
      %127 = arith.mulf %122, %126 : vector<16x128xf32>
      %128 = arith.addf %121, %127 : vector<16x128xf32>
      %129 = vector.extract_strided_slice %107 {offsets = [3, 0], sizes = [16, 128], strides = [1, 1]} : vector<24x128xf32> to vector<16x128xf32>
      %130 = vector.extract_strided_slice %1 {offsets = [15, 0], sizes = [1, 128], strides = [1, 1]} : vector<16x128xf32> to vector<1x128xf32>
      %131 = vector.shape_cast %130 : vector<1x128xf32> to vector<128xf32>
      %132 = vector.shape_cast %131 : vector<128xf32> to vector<1x128xf32>
      %133 = vector.broadcast %132 : vector<1x128xf32> to vector<16x128xf32>
      %134 = arith.mulf %129, %133 : vector<16x128xf32>
      %135 = arith.addf %128, %134 : vector<16x128xf32>
      %136 = vector.shape_cast %135 : vector<16x128xf32> to vector<1x16x128xf32>
      %c0_17 = arith.constant 0 : index
      %137 = arith.index_cast %arg5 : i32 to index
      %c0_18 = arith.constant 0 : index
      %c0_19 = arith.constant 0 : index
      %138 = vector.load %arg4[%c0_17, %137, %c0_18, %c0_19] : memref<1x13x16x128xf32, #tpu.memory_space<vmem>>, vector<1x1x16x128xf32>
      %139 = vector.shape_cast %138 : vector<1x1x16x128xf32> to vector<1x16x128xf32>
      %140 = vector.shape_cast %136 : vector<1x16x128xf32> to vector<1x1x16x128xf32>
      tpu.vector_store %arg4[%c0_17, %137, %c0_18, %c0_19], %140 {strides = array<i32>} : memref<1x13x16x128xf32, #tpu.memory_space<vmem>>, vector<1x1x16x128xf32>,
    }
    %c13_i32_2 = arith.constant 13 : i32
    return
  }
  func.func @transform_0(%arg0: i32, %arg1: i32) -> (i32, i32, i32, i32) {
    %c0_i32 = arith.constant 0 : i32
    %c0_i32_0 = arith.constant 0 : i32
    %c0_i32_1 = arith.constant 0 : i32
    return %arg0, %c0_i32, %c0_i32_0, %arg1 : i32, i32, i32, i32
  }
  func.func @transform_1(%arg0: i32, %arg1: i32) -> (i32, i32, i32) {
    %c0_i32 = arith.constant 0 : i32
    %c0_i32_0 = arith.constant 0 : i32
    return %arg0, %c0_i32, %arg1 : i32, i32, i32
  }
  func.func @transform_2(%arg0: i32, %arg1: i32) -> (i32, i32, i32, i32) {
    %c0_i32 = arith.constant 0 : i32
    %c0_i32_0 = arith.constant 0 : i32
    %c0_i32_1 = arith.constant 0 : i32
    return %arg0, %c0_i32, %c0_i32_0, %arg1 : i32, i32, i32, i32
  }
}

</mosaic_0001>

<bundles_post_ra>
// kernel: tpu_custom_call.1
= control target key start
LH: loop header
LB: loop body
LE: loop exit
PB: predicated region body
PF: predicated region fallthrough
CT: control target
= control target key end

     0   :  { %7 = vsyncpa [#allocation3], 0  ;;  %s1237_s0 = inlined_call_operand.hbm [shape: f32[2,16,24,128], index: 0, kind: input, shape index: {}]   ;;  %s1238_s1 = inlined_call_operand.hbm [shape: f32[2,16,128], index: 1, kind: input, shape index: {}]   ;;  %s1239_s2 = inlined_call_operand.hbm [shape: f32[2,13,16,128], index: 2, kind: output, shape index: {}]  }
   0x1   :  { %9 = vsyncpa [#allocation3 + $0x1], 0 }
   0x2   :  { %10 = vsyncpa [#allocation6], 0 }
   0x3   :  { %12 = vsyncpa [#allocation6 + $0x1], 0 }
   0x4   :  { %13 = vsyncpa [#allocation4], 0 }
   0x5   :  { %15 = vsyncpa [#allocation4 + $0x1], 0  ;;  %s943_s9 = smov 0   ;;  %s945_s10 = smov 0  }
   0x6   :  { %s947_s11 = smov 0   ;;  %s949_s12 = smov 0  }
   0x7   :  { %s951_s13 = smov 0   ;;  %s953_s14 = smov 0  }
   0x8 LB: > { %s663_s15 = sadd.s32 4294967295, %s915_s14   ;;  %s664_s16 = sadd.s32 4294967294, %s915_s14   ;;  %s915_s14 = sphi %s953_s14, %s21_s14   ;;  %s911_s13 = sphi %s951_s13, %s1250_s13   ;;  %s907_s12 = sphi %s949_s12, %s1249_s12   ;;  %s903_s11 = sphi %s947_s11, %s1248_s11   ;;  %s899_s10 = sphi %s945_s10, %s1247_s10   ;;  %s895_s9 = sphi %s943_s9, %s1246_s9  }
   0x9   : > { %s33_s17 = sadd.s32 1, %s911_s13  ;;  %s42_s18 = sadd.s32 1, %s903_s11 }
   0xa   : > { %p35_p0 = scmp.ge.s32.totalorder %s33_s17, 2  ;;  %p49_p1 = scmp.ne.s32.totalorder %s903_s11, %s899_s10 }
   0xb   : > { %p50_p2 = scmp.eq.s32.totalorder %s915_s14, 0  ;;  %p55_p3 = scmp.ne.s32.totalorder %s899_s10, %s895_s9 }
   0xc   : > { %s1252_s17 = smov (%p35_p0, %s33_s17), 0  ;;  %p56_p5 = scmp.eq.s32.totalorder %s663_s15, 0 }
   0xd   : > { %p984_p4 = por %p50_p2, %p49_p1  ;;  %s37_s20 = ssub.s32 %s911_s13, %s1252_s17 }
   0xe   : > { %p109_p6 = scmp.eq.s32.totalorder %s663_s15, 1  ;;  %p40_p7 = scmp.eq.s32.totalorder %s37_s20, 0 }
   0xf   : > { %p990_p8 = por %p56_p5, %p55_p3  ;;  %p115_p10 = scmp.eq.s32.totalorder %s664_s16, 1 }
  0x10   : > { %p994_p9 = por %p109_p6, %p49_p1  ;;  %p666_p12 = scmp.ge.s32.totalorder %s915_s14, 2 }
  0x11   : > { %s999_s23 = scalar_select %p40_p7, %s903_s11, %s42_s18  }
  0x12   : > { %p1001_p11 = por %p115_p10, %p55_p3  ;;  %p709_p13 = scmp.lt.s32.totalorder %s915_s14, 2 }
  0x13   : > { %s1008_s25 = sand.u32 1, %s903_s11   ;;  %s688_s27 = smul.u32 6144, %s911_s13 }
  0x14   : > { %s687_s26 = smul.u32 384, %s1008_s25  ;;  %p1014_p0 = pnand %p709_p13, %p984_p4 }
  0x15   : > { %s146_s3 = scalar_lea.hbm %s1237_s0, %s688_s27  ;;  %p671_p1 = scmp.ge.s32.totalorder %s915_s14, 1 }
  0x16   : > { %s139_s4 = scalar_lea.vmem [#allocation2], %s687_s26  ;;  %s136_s6 = scalar_lea.sflag [#allocation3], %s1008_s25 }
  0x17   : > { %s147_s5 = sshll.u32 %s139_s4, 4  ;;  %p773_p2 = pneg %p1014_p0  ;;  %s148_s5 = int_to_ptr.vmem [resolvable:$true] %s147_s5 }
  0x18   : > { %s784_s7 = scalar_lea.vmem %s148_s5, 6144  ;;  %s921_s8 = smov [#allocation2]  }
  0x19   : > { %p785_p3 = scmp.ne.s32.totalorder %s148_s5, %s784_s7  ;;  %s789_s15 = sshll.u32 %s921_s8, 4  ;;  %s790_s15 = int_to_ptr.vmem [resolvable:$false] %s789_s15 }
  0x1a   : > { %s791_s16 = scalar_lea.vmem %s790_s15, 12288  ;;  %p792_p6 = scmp.lt.s32.totalorder %s148_s5, %s790_s15 }
  0x1b   : > { %p787_p4 = pnand %p785_p3, %p773_p2  ;;  %p793_p7 = scmp.lt.s32.totalorder %s791_s16, %s784_s7 }
  0x1d   : > { %p788_p5 = pneg %p787_p4  ;;  %p794_p10 = por %p793_p7, %p792_p6 }
  0x1f   : > { %p795_p13 = pnand %p794_p10, %p788_p5 }
  0x21   : > { %798 = shalt.err (!%p795_p13)
}
  0x22   : > { %s922_s18 = smov 128   ;;  %s923_s19 = smov 8  }
  0x23   : > { %701 = dma.hbm_to_vmem [thread:$0]  (!%p1014_p0), %s146_s3, 6144, %s148_s5, %s136_s6, %s922_s18, %s922_s18, %s923_s19  }
  0x24   : > { %p177_p3 = scmp.lt.s32.totalorder %s915_s14, 3  ;;  %s668_s20 = sshll.u32 %s1008_s25, 4 }
  0x25   : > { %s686_s26 = sshll.u32 %s911_s13, 8  ;;  %s161_s7 = scalar_lea.vmem [#allocation5], %s668_s20 }
  0x26   : > { %p1035_p4 = pnand %p671_p1, %p177_p3  ;;  %s168_s4 = scalar_lea.hbm %s1238_s1, %s686_s26 }
  0x27   : > { %s169_s8 = sshll.u32 %s161_s7, 4  ;;  %s158_s15 = scalar_lea.sflag [#allocation6], %s1008_s25  ;;  %s170_s8 = int_to_ptr.vmem [resolvable:$true] %s169_s8 }
  0x28   : > { %s812_s16 = scalar_lea.vmem %s170_s8, 256  ;;  %s924_s3 = smov [#allocation5]  }
  0x29   : > { %p813_p5 = scmp.ne.s32.totalorder %s170_s8, %s812_s16  ;;  %s817_s5 = sshll.u32 %s924_s3, 4  ;;  %s818_s5 = int_to_ptr.vmem [resolvable:$false] %s817_s5 }
  0x2a   : > { %s819_s6 = scalar_lea.vmem %s818_s5, 512  ;;  %p820_p1 = scmp.lt.s32.totalorder %s170_s8, %s818_s5 }
  0x2b   : > { %p815_p6 = pnand %p813_p5, %p773_p2  ;;  %p821_p10 = scmp.lt.s32.totalorder %s819_s6, %s812_s16 }
  0x2d   : > { %p816_p7 = pneg %p815_p6  ;;  %p822_p13 = por %p821_p10, %p820_p1 }
  0x2f   : > { %p823_p3 = pnand %p822_p13, %p816_p7 }
  0x31   : > { %826 = shalt.err (!%p823_p3)
}
  0x32   : > { %704 = dma.hbm_to_vmem [thread:$0]  (!%p1014_p0), %s168_s4, 256, %s170_s8, %s158_s15, %s922_s18, %s922_s18, %s923_s19  }
  0x33   : > { %181 = sbr.rel (%p1035_p4) target bundleno = 124 (0x7c), region = 28  ;;  %s1051_s25 = sand.u32 (!%p1035_p4), 1, %s899_s10  }
  0x34   : > { %s689_s20 = smul.u32 (!%p1035_p4), 384, %s1051_s25  ;;  %s184_s26 = scalar_lea.sflag (!%p1035_p4), [#allocation3], %s1051_s25 }
  0x36   : > { %s1055_s29 = scalar_lea.vmem (!%p1035_p4), [#allocation2], %s689_s20 }
  0x38   : > { %882 = dma.done.wait (%p990_p8), %s184_s26, 6144  }
  0x39   : > { %884 = vsyncadd (%p990_p8), %s184_s26, 4294961152  ;;  %s672_s28 = sshll.u32 %s1051_s25, 4  ;;  %s193_s18 = scalar_lea.sflag [#allocation6], %s1051_s25 }
  0x3a   : > { %s196_s19 = scalar_lea.vmem [#allocation5], %s672_s28 }
  0x3b   : > { %886 = dma.done.wait (%p990_p8), %s193_s18, 256  }
  0x3c   : > { %888 = vsyncadd (%p990_p8), %s193_s18, 4294967040  ;;  %s690_s27 = smul.u32 208, %s1051_s25  ;;  %v1068_v0 = vld [vmem:[%s196_s19] sm:$0xff]  ;;  %v1070_v1 = vld [vmem:[%s196_s19 + $0x8] sm:$0xff]  ;;  %s1074_s4 = smov 0  }
  0x3e   : > { %s1072_s30 = scalar_lea.vmem [#allocation7], %s690_s27 }
  0x3f LB: >> { %v235_v2 = vlaneseq  ;;  %s230_s21 = smul.u32 24, %s919_s4  ;;  %vm253_vm0 = vcmask 1046528   ;;  %vm273_vm1 = vcmask 1045504   ;;  %vm293_vm2 = vcmask 1044480   ;;  %s682_s8 = sshll.u32 %s919_s4, 4  ;;  %s919_s4 = sphi %s1074_s4, %s229_s4  }
  0x40   : >> { %s517_s15 = scalar_lea.vmem %s1072_s30, %s682_s8 [#allocation7]  ;;  %s229_s4 = sadd.s32 1, %s919_s4  }
  0x41   : >> { %v1080_v3 = vshrl.u32 %v235_v2, 7  ;;  %s1083_s7 = scalar_lea.vmem %s1055_s29, %s230_s21 [#allocation2]  ;;  %p226_p8 = scmp.ge.s32.totalorder %s229_s4, 13  }
  0x42   : >> { %v232_v8 = vld [vmem:[%s1083_s7] sm:$0xff]  ;;  %v233_v9 = vld [vmem:[%s1083_s7 + $0x8] sm:$0xff]  ;;  %v234_v13 = vld [vmem:[%s1083_s7 + $0x10] sm:$0xff]  ;;  %s691_s16 = smul.u32 (%p226_p8), 3328, %s907_s12  ;;  %s535_s3 = sshll.u32 (%p226_p8), %s1072_s30, 4  ;;  %s1189_s3 = int_to_ptr.vmem [resolvable:$true] %s535_s3 }
  0x43   : >> { %v237_v4 = vsub.s32 0, %v1080_v3  ;;  %v245_v5 = vsub.s32 1, %v1080_v3  ;;  %v265_v6 = vsub.s32 2, %v1080_v3  ;;  %v285_v7 = vsub.s32 3, %v1080_v3  ;;  %v673_v38 = vld [vmem:[%s1083_s7 + $0x18] sm:$0xff]  ;;  %v674_v43 = vld [vmem:[%s1083_s7 + $0x20] sm:$0xff] }
  0x44   : >> { %v311_v10 = vsub.s32 4, %v1080_v3  ;;  %v319_v11 = vsub.s32 5, %v1080_v3  ;;  %v338_v12 = vsub.s32 6, %v1080_v3  ;;  %v357_v21 = vsub.s32 7, %v1080_v3  ;;  %v675_v48 = vld [vmem:[%s1083_s7 + $0x28] sm:$0xff]  ;;  %s1187_s20 = scalar_lea.hbm (%p226_p8), %s1239_s2, %s691_s16  ;;  %s521_s26 = scalar_lea.sflag (%p226_p8), [#allocation4], %s1051_s25 }
  0x45   : >> { %v238_v14 = vrot.slane %v1068_v0, %v237_v4  ;;  %v246_v15 = vrot.slane %v1068_v0, %v245_v5  ;;  %v266_v16 = vrot.slane %v1068_v0, %v265_v6  ;;  %v286_v17 = vrot.slane %v1068_v0, %v285_v7  ;;  %s827_s28 = scalar_lea.vmem (%p226_p8), %s1189_s3, 3328  ;;  %s925_s29 = smov (%p226_p8), [#allocation7]  }
  0x46   : >> { %v312_v18 = vrot.slane %v1068_v0, %v311_v10  ;;  %v320_v19 = vrot.slane %v1068_v0, %v319_v11  ;;  %v339_v20 = vrot.slane %v1068_v0, %v338_v12  ;;  %p828_p0 = scmp.ne.s32.totalorder (%p226_p8), %s1189_s3, %s827_s28  ;;  %s831_s18 = sshll.u32 (%p226_p8), %s925_s29, 4  ;;  %s832_s18 = int_to_ptr.vmem [resolvable:$false] %s831_s18 }
  0x47   : >> { %v239_v22 = vmul.f32 %v238_v14, %v232_v8  ;;  %v240_v23 = vmul.f32 %v238_v14, %v233_v9  ;;  %v247_v24 = vmul.f32 %v246_v15, %v232_v8  ;;  %v248_v25 = vmul.f32 %v246_v15, %v233_v9  ;;  %s833_s12 = scalar_lea.vmem (%p226_p8), %s832_s18, 6656  ;;  %p834_p5 = scmp.lt.s32.totalorder (%p226_p8), %s1189_s3, %s832_s18 }
  0x48   : >> { %v249_v26 = vmul.f32 %v246_v15, %v234_v13  ;;  %v267_v27 = vmul.f32 %v266_v16, %v232_v8  ;;  %v268_v28 = vmul.f32 %v266_v16, %v233_v9  ;;  %v269_v29 = vmul.f32 %v266_v16, %v234_v13  ;;  %p829_p2 = pnand (%p226_p8), %p828_p0, %p994_p9  ;;  %p835_p6 = scmp.lt.s32.totalorder (%p226_p8), %s833_s12, %s827_s28 }
  0x49   : >> { %v254_v30 = vrot.slane %v247_v24, 1  ;;  %v255_v31 = vrot.slane %v248_v25, 1  ;;  %v287_v32 = vmul.f32 %v286_v17, %v232_v8  ;;  %v288_v33 = vmul.f32 %v286_v17, %v233_v9  ;;  %v677_v25 = vld [vmem:[%s1083_s7 + $0x38] sm:$0xff] }
  0x4a   : >> { %v257_v34 = vrot.slane %v249_v26, 1  ;;  %v274_v35 = vrot.slane %v267_v27, 2  ;;  %v275_v36 = vrot.slane %v268_v28, 2  ;;  %v277_v37 = vrot.slane %v269_v29, 2  ;;  %p830_p4 = pneg (%p226_p8), %p829_p2  ;;  %p836_p7 = por (%p226_p8), %p835_p6, %p834_p5 }
  0x4b   : >> { %v256_v39 = vsel %vm253_vm0, %v254_v30, %v255_v31  ;;  %v289_v40 = vmul.f32 %v286_v17, %v234_v13  ;;  %v294_v41 = vrot.slane %v287_v32, 3  ;;  %v295_v42 = vrot.slane %v288_v33, 3 }
  0x4c   : >> { %v258_v44 = vsel %vm253_vm0, %v255_v31, %v257_v34  ;;  %v261_v45 = vadd.f32 %v256_v39, %v239_v22  ;;  %v276_v46 = vsel %vm273_vm1, %v274_v35, %v275_v36  ;;  %v278_v47 = vsel %vm273_vm1, %v275_v36, %v277_v37  ;;  %v676_v22 = vld [vmem:[%s1083_s7 + $0x30] sm:$0xff]  ;;  %p837_p1 = pnand (%p226_p8), %p836_p7, %p830_p4 }
  0x4d   : >> { %v262_v49 = vadd.f32 %v258_v44, %v240_v23  ;;  %v296_v50 = vsel %vm293_vm2, %v294_v41, %v295_v42  ;;  %v297_v51 = vrot.slane %v289_v40, 3  ;;  %v313_v52 = vmul.f32 %v673_v38, %v312_v18  ;;  %v678_v41 = vld [vmem:[%s1083_s7 + $0x40] sm:$0xff] }
  0x4e   : >> { %v281_v53 = vadd.f32 %v276_v46, %v261_v45  ;;  %v314_v54 = vmul.f32 %v674_v43, %v312_v18  ;;  %v321_v55 = vmul.f32 %v673_v38, %v320_v19  ;;  %v322_v56 = vmul.f32 %v674_v43, %v320_v19 }
  0x4f   : >> { %v282_v57 = vadd.f32 %v278_v47, %v262_v49  ;;  %v298_v58 = vsel %vm293_vm2, %v295_v42, %v297_v51  ;;  %v323_v59 = vmul.f32 %v675_v48, %v320_v19  ;;  %v340_v60 = vmul.f32 %v673_v38, %v339_v20 }
  0x50   : >> { %v301_v61 = vadd.f32 %v296_v50, %v281_v53  ;;  %v327_v62 = vrot.slane %v321_v55, 1  ;;  %v328_v63 = vrot.slane %v322_v56, 1  ;;  %v341_v2 = vmul.f32 %v674_v43, %v339_v20 }
  0x51   : >> { %v302_v8 = vadd.f32 %v298_v58, %v282_v57  ;;  %v330_v9 = vrot.slane %v323_v59, 1  ;;  %v342_v13 = vmul.f32 %v675_v48, %v339_v20  ;;  %v346_v14 = vrot.slane %v340_v60, 2 }
  0x52   : >> { %v315_v15 = vadd.f32 %v313_v52, %v301_v61  ;;  %v329_v16 = vsel %vm253_vm0, %v327_v62, %v328_v63  ;;  %v347_v17 = vrot.slane %v341_v2, 2  ;;  %v358_v18 = vrot.slane %v1068_v0, %v357_v21  ;;  %v679_v61 = vld [vmem:[%s1083_s7 + $0x48] sm:$0xff]  ;;  %v680_v62 = vld [vmem:[%s1083_s7 + $0x50] sm:$0xff] }
  0x53   : >> { %v316_v19 = vadd.f32 %v314_v54, %v302_v8  ;;  %v331_v23 = vsel %vm253_vm0, %v328_v63, %v330_v9  ;;  %v349_v24 = vrot.slane %v342_v13, 2  ;;  %v383_v20 = vrot.slane %v1070_v1, %v237_v4 }
  0x54   : >> { %v334_v26 = vadd.f32 %v329_v16, %v315_v15  ;;  %v348_v27 = vsel %vm273_vm1, %v346_v14, %v347_v17  ;;  %v359_v28 = vmul.f32 %v673_v38, %v358_v18  ;;  %v360_v29 = vmul.f32 %v674_v43, %v358_v18 }
  0x55   : >> { %v335_v30 = vadd.f32 %v331_v23, %v316_v19  ;;  %v350_v31 = vsel %vm273_vm1, %v347_v17, %v349_v24  ;;  %v361_v32 = vmul.f32 %v675_v48, %v358_v18  ;;  %v384_v33 = vmul.f32 %v676_v22, %v383_v20  ;;  %v681_v17 = vld [vmem:[%s1083_s7 + $0x58] sm:$0xff] }
  0x56   : >> { %v353_v34 = vadd.f32 %v348_v27, %v334_v26  ;;  %v365_v35 = vrot.slane %v359_v28, 3  ;;  %v366_v36 = vrot.slane %v360_v29, 3  ;;  %v385_v37 = vmul.f32 %v677_v25, %v383_v20 }
  0x57   : >> { %v354_v39 = vadd.f32 %v350_v31, %v335_v30  ;;  %v368_v40 = vrot.slane %v361_v32, 3  ;;  %v391_v4 = vrot.slane %v1070_v1, %v245_v5  ;;  %v410_v38 = vrot.slane %v1070_v1, %v265_v6 }
  0x58   : >> { %v367_v42 = vsel %vm293_vm2, %v365_v35, %v366_v36  ;;  %v429_v43 = vrot.slane %v1070_v1, %v285_v7  ;;  %v454_v44 = vrot.slane %v1070_v1, %v311_v10  ;;  %v462_v45 = vrot.slane %v1070_v1, %v319_v11 }
  0x59   : >> { %v369_v5 = vsel %vm293_vm2, %v366_v36, %v368_v40  ;;  %v372_v46 = vadd.f32 %v367_v42, %v353_v34  ;;  %v392_v47 = vmul.f32 %v676_v22, %v391_v4  ;;  %v393_v48 = vmul.f32 %v677_v25, %v391_v4 }
  0x5a   : >> { %v373_v6 = vadd.f32 %v369_v5, %v354_v39  ;;  %v394_v49 = vmul.f32 %v678_v41, %v391_v4  ;;  %v411_v50 = vmul.f32 %v676_v22, %v410_v38  ;;  %v412_v51 = vmul.f32 %v677_v25, %v410_v38 }
  0x5b   : >> { %v386_v7 = vadd.f32 %v384_v33, %v372_v46  ;;  %v398_v52 = vrot.slane %v392_v47, 1  ;;  %v399_v53 = vrot.slane %v393_v48, 1  ;;  %v413_v54 = vmul.f32 %v678_v41, %v410_v38 }
  0x5c   : >> { %v387_v10 = vadd.f32 %v385_v37, %v373_v6  ;;  %v401_v55 = vrot.slane %v394_v49, 1  ;;  %v417_v56 = vrot.slane %v411_v50, 2  ;;  %v418_v11 = vrot.slane %v412_v51, 2 }
  0x5d   : >> { %v400_v57 = vsel %vm253_vm0, %v398_v52, %v399_v53  ;;  %v420_v58 = vrot.slane %v413_v54, 2  ;;  %v430_v59 = vmul.f32 %v676_v22, %v429_v43  ;;  %v431_v60 = vmul.f32 %v677_v25, %v429_v43 }
  0x5e   : >> { %v402_v63 = vsel %vm253_vm0, %v399_v53, %v401_v55  ;;  %v405_v2 = vadd.f32 %v400_v57, %v386_v7  ;;  %v419_v8 = vsel %vm273_vm1, %v417_v56, %v418_v11  ;;  %v432_v9 = vmul.f32 %v678_v41, %v429_v43 }
  0x5f   : >> { %v406_v13 = vadd.f32 %v402_v63, %v387_v10  ;;  %v421_v14 = vsel %vm273_vm1, %v418_v11, %v420_v58  ;;  %v436_v15 = vrot.slane %v430_v59, 3  ;;  %v437_v16 = vrot.slane %v431_v60, 3 }
  0x60   : >> { %v424_v18 = vadd.f32 %v419_v8, %v405_v2  ;;  %v439_v19 = vrot.slane %v432_v9, 3  ;;  %v455_v23 = vmul.f32 %v679_v61, %v454_v44  ;;  %v456_v24 = vmul.f32 %v680_v62, %v454_v44 }
  0x61   : >> { %v425_v22 = vadd.f32 %v421_v14, %v406_v13  ;;  %v438_v25 = vsel %vm293_vm2, %v436_v15, %v437_v16  ;;  %v463_v20 = vmul.f32 %v679_v61, %v462_v45  ;;  %v464_v26 = vmul.f32 %v680_v62, %v462_v45 }
  0x62   : >> { %v440_v27 = vsel %vm293_vm2, %v437_v16, %v439_v19  ;;  %v443_v28 = vadd.f32 %v438_v25, %v424_v18  ;;  %v465_v29 = vmul.f32 %v681_v17, %v462_v45  ;;  %v481_v30 = vrot.slane %v1070_v1, %v338_v12 }
  0x63   : >> { %v444_v31 = vadd.f32 %v440_v27, %v425_v22  ;;  %v469_v32 = vrot.slane %v463_v20, 1  ;;  %v470_v33 = vrot.slane %v464_v26, 1  ;;  %v500_v34 = vrot.slane %v1070_v1, %v357_v21 }
  0x64   : >> { %v457_v35 = vadd.f32 %v455_v23, %v443_v28  ;;  %v472_v36 = vrot.slane %v465_v29, 1  ;;  %v482_v37 = vmul.f32 %v679_v61, %v481_v30  ;;  %v483_v39 = vmul.f32 %v680_v62, %v481_v30 }
  0x65   : >> { %v458_v40 = vadd.f32 %v456_v24, %v444_v31  ;;  %v471_v41 = vsel %vm253_vm0, %v469_v32, %v470_v33  ;;  %v484_v4 = vmul.f32 %v681_v17, %v481_v30  ;;  %v501_v38 = vmul.f32 %v679_v61, %v500_v34 }
  0x66   : >> { %v473_v42 = vsel %vm253_vm0, %v470_v33, %v472_v36  ;;  %v476_v12 = vadd.f32 %v471_v41, %v457_v35  ;;  %v488_v43 = vrot.slane %v482_v37, 2  ;;  %v489_v44 = vrot.slane %v483_v39, 2 }
  0x67   : >> { %v477_v45 = vadd.f32 %v473_v42, %v458_v40  ;;  %v491_v3 = vrot.slane %v484_v4, 2  ;;  %v502_v5 = vmul.f32 %v680_v62, %v500_v34  ;;  %v503_v21 = vmul.f32 %v681_v17, %v500_v34 }
  0x68   : >> { %v490_v46 = vsel %vm273_vm1, %v488_v43, %v489_v44  ;;  %v507_v47 = vrot.slane %v501_v38, 3 }
  0x69   : >> { %v492_v48 = vsel %vm273_vm1, %v489_v44, %v491_v3  ;;  %v495_v6 = vadd.f32 %v490_v46, %v476_v12  ;;  %v508_v49 = vrot.slane %v502_v5, 3  ;;  %v510_v50 = vrot.slane %v503_v21, 3 }
  0x6a   : >> { %v496_v51 = vadd.f32 %v492_v48, %v477_v45  ;;  %228 = sbr.rel (!%p226_p8) target bundleno = 63 (0x3f), region = 98 }
  0x6b   : >> { %v509_v7 = vsel %vm293_vm2, %v507_v47, %v508_v49  ;;  %v511_v52 = vsel %vm293_vm2, %v508_v49, %v510_v50 }
  0x6c   : >> { %v514_v53 = vadd.f32 %v509_v7, %v495_v6  ;;  %v515_v54 = vadd.f32 %v511_v52, %v496_v51 }
  0x6e   : >> { %518 = vst [vmem:[%s517_s15] sm:$0xff] %v514_v53  ;;  %519 = vst [vmem:[%s517_s15 + $0x8] sm:$0xff] %v515_v54 }
  0x6f   : > { %840 = shalt.err (!%p837_p1)
}
  0x70   : > { %s841_s19 = scalar_lea.hbm %s1187_s20, 3328  ;;  %s845_s4 = scalar_lea.hbm %s1239_s2, 6656 }
  0x71   : > { %p842_p10 = scmp.ne.s32.totalorder %s1187_s20, %s841_s19  ;;  %p846_p8 = scmp.lt.s32.totalorder %s1187_s20, %s1239_s2 }
  0x72   : > { %p847_p0 = scmp.lt.s32.totalorder %s845_s4, %s841_s19 }
  0x73   : > { %p843_p13 = pnand %p842_p10, %p994_p9 }
  0x74   : > { %p848_p2 = por %p847_p0, %p846_p8 }
  0x75   : > { %p844_p3 = pneg %p843_p13 }
  0x77   : > { %p849_p4 = pnand %p848_p2, %p844_p3 }
  0x79   : > { %852 = shalt.err (!%p849_p4)
}
  0x7a   : > { %s926_s8 = smov 128   ;;  %s927_s15 = smov 8  }
  0x7b   : > { %696 = dma.vmem_to_hbm [thread:$0]  (%p994_p9), %s1189_s3, 3328, %s1187_s20, %s521_s26, %s926_s8, %s926_s8, %s927_s15  }
  0x7c PF: > { %s550_s16 = sand.u32 1, %s895_s9   ;;  %p706_p5 = pnand %p666_p12, %p1001_p11 }
  0x7d   : > { %s551_s5 = scalar_lea.sflag [#allocation4], %s550_s16 }
  0x7e   : > { %p707_p6 = pneg %p706_p5 }
  0x80   : > { %890 = dma.done.wait (%p707_p6), %s551_s5, 3328  }
  0x81   : > { %892 = vsyncadd (%p707_p6), %s551_s5, 4294963968  ;;  %s21_s14 = sadd.s32 1, %s915_s14   ;;  %s1246_s9 = smov %s899_s10 }
  0x82   : > { %p18_p7 = scmp.ge.s32.totalorder %s21_s14, 4   ;;  %s1247_s10 = smov %s903_s11 }
  0x83   : > { %s1248_s11 = smov %s999_s23  ;;  %s1249_s12 = smov %s911_s13 }
  0x84   : > { %s1250_s13 = smov %s1252_s17  ;;  %20 = sbr.rel (!%p18_p7) target bundleno = 8 (0x8), region = 109 }
  0x89   :  { %556 = vsyncpa [#allocation3], 1 }
  0x8a   :  { %558 = vsyncpa [#allocation3 + $0x1], 1 }
  0x8b   :  { %559 = vsyncpa [#allocation6], 1 }
  0x8c   :  { %561 = vsyncpa [#allocation6 + $0x1], 1 }
  0x8d   :  { %562 = vsyncpa [#allocation4], 1 }
  0x8e   :  { %564 = vsyncpa [#allocation4 + $0x1], 1 }

</bundles_post_ra>
